<compile_context>
chip_gen: v6e
topology: v6e:2x2x1
jax: 0.10.0
libtpu: 0.0.40
codegen_flags: <defaults>
</compile_context>

<pallas_src>
import functools
import math

import jax
import jax.numpy as jnp
from jax import lax
from jax.experimental import pallas as pl
from jax.experimental.pallas import tpu as pltpu

_LANE = 128


def _round_up(x, m):
    return ((x + m - 1) // m) * m


def _round_down(x, m):
    return (x // m) * m


def _cdiv(a, b):
    return -(-a // b)


def _tpu_vmem_capacity_bytes():
    """Physical VMEM of the local TPU; conservative fallback if the query fails."""
    try:
        info = pltpu.get_tpu_info()
        for attr in ("vmem_capacity_bytes", "vmem_bytes", "vmem_size_bytes"):
            cap = getattr(info, attr, None)
            if cap:
                return int(cap)
    except Exception:
        pass
    return 64 * 1024 * 1024  # smallest current part (v7x) -> always-safe sizing


# ----------------------------------------------------------------------------
# Parameter setup (glue): "naive" grid quadrature weights on S^2, normalized.
# ----------------------------------------------------------------------------
def naive_s2_quadrature_weights(img_shape, crop_shape, crop_offset,
                                normalize=True, pole_mask=0):
    H, W = img_shape
    jac = jnp.maximum(jnp.sin(jnp.linspace(0.0, math.pi, H)), 0.0)  # clamp(sin(theta), 0)
    dtheta = math.pi / H
    dlambda = 2.0 * math.pi / W
    dA = dtheta * dlambda
    qw = dA * jac[:, None] * jnp.ones((1, W), dtype=jnp.float32)    # (H, W)
    qw = qw * (4.0 * math.pi) / jnp.sum(qw)                         # integrate to 4*pi
    if normalize:
        qw = qw / (4.0 * math.pi)
    if pole_mask > 0:
        qw = qw.at[:pole_mask, :].set(0.0)
        qw = qw.at[H - pole_mask:, :].set(0.0)
    h0, w0 = crop_offset
    ch, cw = crop_shape
    qw = qw[h0:h0 + ch, w0:w0 + cw]
    return qw.astype(jnp.float32)


def _int_pow(x, n):
    """x^n via plain multiplies (VALU slots) -- no EUP exp/log transcendentals."""
    n = int(n)
    result = None
    base = x
    while n > 0:
        if n & 1:
            result = base if result is None else result * base
        n >>= 1
        if n:
            base = base * base
    return result


# ----------------------------------------------------------------------------
# Pallas kernel: one (row-block, spatial-tile) partial weighted-Lp sum per step.
# Grid = (n_row_blocks, n_spatial_tiles), both "parallel" (megacore friendly).
# ----------------------------------------------------------------------------
def _geometric_lp_partial_kernel(prd_ref, tar_ref, qw_ref, *out_refs,
                                 p, Ts, S, needs_mask, qw_resident, compute_tn):
    sp = pl.program_id(1)

    # quadrature row for this spatial tile (zero-padded past S)
    if qw_resident:
        qw = qw_ref[pl.ds(sp, 1), :]           # VMEM-resident table, one row per tile
    else:
        qw = qw_ref[...]                       # streamed (1, Ts) tile

    prd = prd_ref[...].astype(jnp.float32)     # upcast before |.|^p (bf16-safe)
    tar = tar_ref[...].astype(jnp.float32)
    diff = jnp.abs(prd - tar)

    if float(p).is_integer() and p >= 1.0:
        diff_p = _int_pow(diff, p)             # repeated multiplies, no transcendentals
    else:
        diff_p = diff ** p                     # general p: exp/log path on the EUP

    valid = None
    if needs_mask:
        # The last spatial tile is a partial block: out-of-bounds lanes hold garbage
        # (possibly NaN/Inf) -- mask them explicitly; do NOT rely on qw==0 (0*NaN==NaN).
        lane = lax.broadcasted_iota(jnp.int32, diff_p.shape, 1)
        valid = (sp * Ts + lane) < S
        diff_p = jnp.where(valid, diff_p, 0.0)

    dn_ref = out_refs[0]
    dn_ref[...] = jnp.sum(diff_p * qw, axis=-1).reshape(dn_ref.shape)

    if compute_tn:                             # skipped entirely when absolute=True
        atar = jnp.abs(tar)
        if float(p).is_integer() and p >= 1.0:
            tar_p = _int_pow(atar, p)
        else:
            tar_p = atar ** p
        if needs_mask:
            tar_p = jnp.where(valid, tar_p, 0.0)
        tn_ref = out_refs[1]
        tn_ref[...] = jnp.sum(tar_p * qw, axis=-1).reshape(tn_ref.shape)


# ----------------------------------------------------------------------------
# Wrapper
# ----------------------------------------------------------------------------
def geometric_lp_loss(prd, tar, chw, quad_weight, *, p=2.0, absolute=False,
                      squared=False, reduction=True, size_average=False):
    B, C, H, W = prd.shape
    assert tar.shape == prd.shape
    assert quad_weight.shape == (H, W)
    assert chw.shape == (C,)
    p = float(p)

    if prd.dtype not in (jnp.float32, jnp.bfloat16, jnp.float16):
        prd = prd.astype(jnp.float32)
        tar = tar.astype(jnp.float32)
    dtype = prd.dtype
    itemsize = jnp.dtype(dtype).itemsize
    sub = {4: 8, 2: 16, 1: 32}[itemsize]        # sublane packing multiple for this dtype

    R = B * C                                   # flattened row axis (sublane-full blocks)
    S = H * W                                   # flattened spatial axis (lane-dense)

    # ---- generation-aware sizing (v5e/v6e: 128 MiB VMEM, v7x: 64 MiB) ----------
    vmem_cap = _tpu_vmem_capacity_bytes()
    block_bytes = max(min(vmem_cap // 16, 8 << 20), 256 << 10)   # per-input block
    qw_budget = max(min(vmem_cap // 8, 16 << 20), 1 << 20)       # resident-qw cap
    vmem_limit = int(min(vmem_cap * 3 // 4, 64 << 20))
    block_elems = max(block_bytes // itemsize, sub * _LANE)

    # ---- tile sizes: lane-dense spatial tiles, sublane-full row blocks ---------
    Ts = min(_round_up(S, _LANE), max(_round_down(block_elems // sub, _LANE), _LANE))
    Rt = max(sub, min(_round_down(block_elems // Ts, sub), _round_up(R, sub)))

    # v7x has two TensorCores: guarantee >= 2 parallel grid blocks whenever the
    # problem is large enough for the split to pay off.
    if _cdiv(R, Rt) * _cdiv(S, Ts) < 2 and R * S * itemsize >= (2 << 20):
        if Rt >= 2 * sub and R > sub:
            Rt = _round_up(_cdiv(R, 2), sub)
        elif Ts > _LANE:
            Ts = _round_up(_cdiv(Ts, 2), _LANE)

    n_r = _cdiv(R, Rt)
    n_sp = _cdiv(S, Ts)
    Sq = n_sp * Ts
    needs_mask = (Sq != S)                      # partial last spatial tile -> in-kernel mask

    # ---- inputs: pure reshapes, NO padded copies of the big tensors ------------
    prd_f = prd.reshape(R, S)
    tar_f = tar.reshape(R, S)

    qw_flat = quad_weight.reshape(S).astype(jnp.float32)
    if Sq != S:
        qw_flat = jnp.pad(qw_flat, (0, Sq - S))  # cheap: only (S,) floats

    # Quadrature table residency: DMA'd once (constant index map) when it fits.
    qw_resident = _round_up(n_sp, 8) * Ts * 4 <= qw_budget
    if qw_resident:
        qw_arr = qw_flat.reshape(n_sp, Ts)
        qw_spec = pl.BlockSpec((n_sp, Ts), lambda r, sp: (0, 0))
    else:
        qw_arr = qw_flat.reshape(1, Sq)
        qw_spec = pl.BlockSpec((1, Ts), lambda r, sp: (0, sp))

    compute_tn = not absolute
    kernel = functools.partial(
        _geometric_lp_partial_kernel, p=p, Ts=Ts, S=S, needs_mask=needs_mask,
        qw_resident=qw_resident, compute_tn=compute_tn)

    part_shape = jax.ShapeDtypeStruct((n_r, n_sp, 1, Rt), jnp.float32)
    part_spec = pl.BlockSpec((1, 1, 1, Rt), lambda r, sp: (r, sp, 0, 0))
    n_out = 2 if compute_tn else 1
    out_shapes = (part_shape,) * n_out
    out_specs = (part_spec,) * n_out

    n_elem = R * S
    cost = pl.CostEstimate(
        flops=(10 if compute_tn else 6) * n_elem,
        transcendentals=0 if p.is_integer() else (4 if compute_tn else 2) * n_elem,
        bytes_accessed=2 * n_elem * itemsize + Sq * 4,
    )

    partials = pl.pallas_call(
        kernel,
        out_shape=out_shapes,
        grid=(n_r, n_sp),
        in_specs=[
            pl.BlockSpec((Rt, Ts), lambda r, sp: (r, sp)),   # prd rows x spatial tile
            pl.BlockSpec((Rt, Ts), lambda r, sp: (r, sp)),   # tar rows x spatial tile
            qw_spec,
        ],
        out_specs=out_specs,
        compiler_params=pltpu.CompilerParams(
            dimension_semantics=("parallel", "parallel"),
            vmem_limit_bytes=vmem_limit,
        ),
        cost_estimate=cost,
    )(prd_f, tar_f, qw_arr)
    if not isinstance(partials, (list, tuple)):
        partials = (partials,)

    # ---- tiny JAX epilogue: sum tiles, drop remainder rows, divide, root, chw --
    def _fold(x):
        return jnp.sum(x, axis=1).reshape(-1)[:R].reshape(B, C)

    dn = _fold(partials[0])
    if absolute:
        norms = dn
    else:
        tn = _fold(partials[1])
        norms = dn / tn        # intentionally no epsilon: matches the PyTorch module
    if not squared:
        norms = jnp.sqrt(norms) if p == 2.0 else norms ** (1.0 / p)
    retval = chw[None, :] * norms
    if reduction:
        return jnp.mean(retval) if size_average else jnp.sum(retval)
    return retval


# ----------------------------------------------------------------------------
# Pure-JAX reference (mirrors the PyTorch forward)
# ----------------------------------------------------------------------------
def reference_loss(prd, tar, chw, qw, *, p=2.0, absolute=False, squared=False,
                   reduction=True, size_average=False):
    B = prd.shape[0]
    dn = jnp.sum(jnp.abs(prd - tar) ** p * qw[None, None], axis=(-2, -1)).reshape(B, -1)
    if absolute:
        norms = dn
    else:
        tn = jnp.sum(jnp.abs(tar) ** p * qw[None, None], axis=(-2, -1)).reshape(B, -1)
        norms = dn / tn
    if not squared:
        norms = norms ** (1.0 / p)
    retval = chw * norms
    if reduction:
        return jnp.mean(retval) if size_average else jnp.sum(retval)
    return retval


if __name__ == "__main__":
    def make_inputs(B, C, H, W, key):
        k1, k2 = jax.random.split(key)
        prd = jax.random.normal(k1, (B, C, H, W), dtype=jnp.float32)
        tar = jax.random.normal(k2, (B, C, H, W), dtype=jnp.float32) + 0.5
        chw = jnp.linspace(0.5, 1.5, C, dtype=jnp.float32)
        qw = naive_s2_quadrature_weights((H, W), (H, W), (0, 0),
                                         normalize=True, pole_mask=0)
        return prd, tar, chw, qw

    # --- case 1: default relative loss, p=2, reduction=True (sum) -------------------
    B, C, H, W = 2, 4, 16, 32
    prd, tar, chw, qw = make_inputs(B, C, H, W, jax.random.PRNGKey(0))
    f1 = jax.jit(functools.partial(geometric_lp_loss, p=2.0))
    out1 = jax.block_until_ready(f1(prd, tar, chw, qw))
    ref1 = reference_loss(prd, tar, chw, qw, p=2.0)
    assert jnp.allclose(out1, ref1, rtol=1e-4, atol=1e-5), (out1, ref1)

    # --- case 2: unreduced per-(batch, channel) losses ------------------------------
    f2 = jax.jit(functools.partial(geometric_lp_loss, p=2.0, reduction=False))
    out2 = jax.block_until_ready(f2(prd, tar, chw, qw))
    ref2 = reference_loss(prd, tar, chw, qw, p=2.0, reduction=False)
    assert out2.shape == (B, C)
    assert jnp.allclose(out2, ref2, rtol=1e-4, atol=1e-5), (out2, ref2)

    # --- case 3: absolute loss with integer p=3 (dn-only kernel, integer-pow path) ---
    f3 = jax.jit(functools.partial(geometric_lp_loss, p=3.0, absolute=True))
    out3 = jax.block_until_ready(f3(prd, tar, chw, qw))
    ref3 = reference_loss(prd, tar, chw, qw, p=3.0, absolute=True)
    assert jnp.allclose(out3, ref3, rtol=1e-4, atol=1e-5), (out3, ref3)

    # --- case 4: ragged shapes (C not a multiple of 8, H*W not a multiple of 128) ----
    B4, C4, H4, W4 = 2, 3, 15, 17
    prd4, tar4, chw4, qw4 = make_inputs(B4, C4, H4, W4, jax.random.PRNGKey(1))
    f4 = jax.jit(functools.partial(geometric_lp_loss, p=2.0))
    out4 = jax.block_until_ready(f4(prd4, tar4, chw4, qw4))
    ref4 = reference_loss(prd4, tar4, chw4, qw4, p=2.0)
    assert jnp.allclose(out4, ref4, rtol=1e-4, atol=1e-5), (out4, ref4)

    print("KERNEL_OK")
</pallas_src>

<mosaic_0001>
module attributes {stable_mosaic.version = 11 : i64} {
  func.func @_geometric_lp_partial_kernel(%arg0: i32, %arg1: i32, %arg2: memref<8x512xf32, #tpu.memory_space<vmem>>, %arg3: memref<8x512xf32, #tpu.memory_space<vmem>>, %arg4: memref<1x512xf32, #tpu.memory_space<vmem>>, %arg5: memref<1x1x1x8xf32, #tpu.memory_space<vmem>>, %arg6: memref<1x1x1x8xf32, #tpu.memory_space<vmem>>) attributes {dimension_semantics = [#tpu.dimension_semantics<parallel>, #tpu.dimension_semantics<parallel>], iteration_bounds = array<i64: 1, 1>, scalar_prefetch = 0 : i64, scratch_operands = 0 : i64, tpu.core_type = #tpu.core_type<tc>, window_params = [{transform_indices = @transform_0, window_bounds = array<i64: 8, 512>}, {transform_indices = @transform_1, window_bounds = array<i64: 8, 512>}, {pipeline_mode = #tpu.pipeline_mode<synchronous>, transform_indices = @transform_2, window_bounds = array<i64: 1, 512>}, {transform_indices = @transform_3, window_bounds = array<i64: 1, 1, 1, 8>}, {transform_indices = @transform_4, window_bounds = array<i64: 1, 1, 1, 8>}]} {
    %0 = arith.index_cast %arg1 : i32 to index
    %c0 = arith.constant 0 : index
    %1 = vector.load %arg4[%0, %c0] : memref<1x512xf32, #tpu.memory_space<vmem>>, vector<1x512xf32>
    %c0_0 = arith.constant 0 : index
    %c0_1 = arith.constant 0 : index
    %2 = vector.load %arg2[%c0_0, %c0_1] : memref<8x512xf32, #tpu.memory_space<vmem>>, vector<8x512xf32>
    %c0_2 = arith.constant 0 : index
    %c0_3 = arith.constant 0 : index
    %3 = vector.load %arg3[%c0_2, %c0_3] : memref<8x512xf32, #tpu.memory_space<vmem>>, vector<8x512xf32>
    %4 = arith.subf %2, %3 : vector<8x512xf32>
    %5 = math.absf %4 : vector<8x512xf32>
    %6 = arith.mulf %5, %5 : vector<8x512xf32>
    %7 = vector.broadcast %1 : vector<1x512xf32> to vector<8x512xf32>
    %8 = arith.mulf %6, %7 : vector<8x512xf32>
    %cst = arith.constant dense<0.000000e+00> : vector<8xf32>
    %9 = vector.multi_reduction <add>, %8, %cst [1] : vector<8x512xf32> to vector<8xf32>
    %10 = vector.shape_cast %9 : vector<8xf32> to vector<1x1x1x8xf32>
    %c0_4 = arith.constant 0 : index
    %c0_5 = arith.constant 0 : index
    %c0_6 = arith.constant 0 : index
    %c0_7 = arith.constant 0 : index
    %11 = vector.load %arg5[%c0_4, %c0_5, %c0_6, %c0_7] : memref<1x1x1x8xf32, #tpu.memory_space<vmem>>, vector<1x1x1x8xf32>
    tpu.vector_store %arg5[%c0_4, %c0_5, %c0_6, %c0_7], %10 {strides = array<i32>} : memref<1x1x1x8xf32, #tpu.memory_space<vmem>>, vector<1x1x1x8xf32>,
    %12 = math.absf %3 : vector<8x512xf32>
    %13 = arith.mulf %12, %12 : vector<8x512xf32>
    %14 = vector.broadcast %1 : vector<1x512xf32> to vector<8x512xf32>
    %15 = arith.mulf %13, %14 : vector<8x512xf32>
    %cst_8 = arith.constant dense<0.000000e+00> : vector<8xf32>
    %16 = vector.multi_reduction <add>, %15, %cst_8 [1] : vector<8x512xf32> to vector<8xf32>
    %17 = vector.shape_cast %16 : vector<8xf32> to vector<1x1x1x8xf32>
    %c0_9 = arith.constant 0 : index
    %c0_10 = arith.constant 0 : index
    %c0_11 = arith.constant 0 : index
    %c0_12 = arith.constant 0 : index
    %18 = vector.load %arg6[%c0_9, %c0_10, %c0_11, %c0_12] : memref<1x1x1x8xf32, #tpu.memory_space<vmem>>, vector<1x1x1x8xf32>
    tpu.vector_store %arg6[%c0_9, %c0_10, %c0_11, %c0_12], %17 {strides = array<i32>} : memref<1x1x1x8xf32, #tpu.memory_space<vmem>>, vector<1x1x1x8xf32>,
    return
  }
  func.func @transform_0(%arg0: i32, %arg1: i32) -> (i32, i32) {
    %c0_i32 = arith.constant 0 : i32
    return %arg0, %arg1 : i32, i32
  }
  func.func @transform_1(%arg0: i32, %arg1: i32) -> (i32, i32) {
    %c0_i32 = arith.constant 0 : i32
    return %arg0, %arg1 : i32, i32
  }
  func.func @transform_2(%arg0: i32, %arg1: i32) -> (i32, i32) {
    %c0_i32 = arith.constant 0 : i32
    %c0_i32_0 = arith.constant 0 : i32
    %c0_i32_1 = arith.constant 0 : i32
    return %c0_i32, %c0_i32_0 : i32, i32
  }
  func.func @transform_3(%arg0: i32, %arg1: i32) -> (i32, i32, i32, i32) {
    %c0_i32 = arith.constant 0 : i32
    %c0_i32_0 = arith.constant 0 : i32
    %c0_i32_1 = arith.constant 0 : i32
    return %arg0, %arg1, %c0_i32, %c0_i32_0 : i32, i32, i32, i32
  }
  func.func @transform_4(%arg0: i32, %arg1: i32) -> (i32, i32, i32, i32) {
    %c0_i32 = arith.constant 0 : i32
    %c0_i32_0 = arith.constant 0 : i32
    %c0_i32_1 = arith.constant 0 : i32
    return %arg0, %arg1, %c0_i32, %c0_i32_0 : i32, i32, i32, i32
  }
}

</mosaic_0001>

<bundles_post_ra>
// kernel: geometric_lp_loss.1
= control target key start
LH: loop header
LB: loop body
LE: loop exit
PB: predicated region body
PF: predicated region fallthrough
CT: control target
= control target key end

     0   :  { %v40_v0 = vlaneseq  ;;  %vm77_vm0 = vcmask 57344   ;;  %s169_s0 = inlined_call_operand.vmem [shape: f32[8,512], index: 0, kind: input, shape index: {}]   ;;  %s170_s1 = inlined_call_operand.vmem [shape: f32[8,512], index: 1, kind: input, shape index: {}]   ;;  %s171_s2 = inlined_call_operand.vmem [shape: f32[1,512], index: 2, kind: input, shape index: {}]   ;;  %s172_s3 = inlined_call_operand.vmem [shape: f32[1,1,1,8], index: 3, kind: output, shape index: {0}]   ;;  %s173_s4 = inlined_call_operand.vmem [shape: f32[1,1,1,8], index: 4, kind: output, shape index: {1}]  }
   0x1   :  { %v18_v1 = vld [vmem:[%s171_s2] sm:$0xf]  ;;  %v20_v3 = vld [vmem:[%s169_s0 + $0x8] sm:$0xff]  ;;  %v21_v4 = vld [vmem:[%s169_s0 + $0x10] sm:$0xff] }
   0x2   :  { %v19_v2 = vld [vmem:[%s169_s0] sm:$0xff]  ;;  %v22_v5 = vld [vmem:[%s169_s0 + $0x18] sm:$0xff]  ;;  %v41_v7 = vshrl.u32 %v40_v0, 7  ;;  %v24_v8 = vld [vmem:[%s170_s1 + $0x8] sm:$0xff]  ;;  %v71_v13 = vand.u32 127, %v40_v0 }
   0x3   :  { %v23_v6 = vld [vmem:[%s170_s1] sm:$0xff]  ;;  %v25_v9 = vld [vmem:[%s170_s1 + $0x10] sm:$0xff]  ;;  %v26_v10 = vld [vmem:[%s170_s1 + $0x18] sm:$0xff]  ;;  %v28_v14 = vsub.f32 %v20_v3, %v24_v8  ;;  %v80_v33 = vand.u32 2147483647, %v24_v8 }
   0x4   :  { %v27_v11 = vsub.f32 %v19_v2, %v23_v6  ;;  %v79_v12 = vand.u32 2147483647, %v23_v6  ;;  %v29_v15 = vsub.f32 %v21_v4, %v25_v9  ;;  %v30_v16 = vsub.f32 %v22_v5, %v26_v10 }
   0x5   :  { %v42_v17 = vsub.s32 0, %v41_v7  ;;  %v46_v19 = vsub.s32 1, %v41_v7  ;;  %v50_v20 = vsub.s32 2, %v41_v7  ;;  %v54_v21 = vsub.s32 3, %v41_v7 }
   0x6   :  { %v31_v18 = vand.u32 2147483647, %v27_v11  ;;  %v32_v22 = vand.u32 2147483647, %v28_v14  ;;  %v33_v23 = vand.u32 2147483647, %v29_v15  ;;  %v83_v37 = vmul.f32 %v79_v12, %v79_v12 }
   0x7   :  { %v34_v24 = vand.u32 2147483647, %v30_v16  ;;  %v43_v25 = vrot.slane %v18_v1, %v42_v17  ;;  %v47_v27 = vrot.slane %v18_v1, %v46_v19  ;;  %v51_v28 = vrot.slane %v18_v1, %v50_v20 }
   0x8   :  { %v35_v26 = vmul.f32 %v31_v18, %v31_v18  ;;  %v55_v29 = vrot.slane %v18_v1, %v54_v21  ;;  %v36_v30 = vmul.f32 %v32_v22, %v32_v22  ;;  %v37_v31 = vmul.f32 %v33_v23, %v33_v23 }
   0x9   :  { %v38_v32 = vmul.f32 %v34_v24, %v34_v24  ;;  %v81_v35 = vand.u32 2147483647, %v25_v9  ;;  %v82_v36 = vand.u32 2147483647, %v26_v10  ;;  %v84_v40 = vmul.f32 %v80_v33, %v80_v33 }
   0xa   :  { %v60_v34 = vmul.f32 %v43_v25, %v35_v26  ;;  %v61_v38 = vmul.f32 %v47_v27, %v36_v30  ;;  %v62_v39 = vmul.f32 %v51_v28, %v37_v31  ;;  %v87_v43 = vmul.f32 %v83_v37, %v43_v25 }
   0xb   :  { %v85_v41 = vmul.f32 %v81_v35, %v81_v35  ;;  %v86_v42 = vmul.f32 %v82_v36, %v82_v36  ;;  %v74_v44 = vsub.s32 %v71_v13, %v41_v7  ;;  %v63_v45 = vmul.f32 %v55_v29, %v38_v32 }
   0xc   :  { %v64_v46 = vadd.f32 %v61_v38, %v60_v34  ;;  %v88_v47 = vmul.f32 %v84_v40, %v47_v27 }
   0xd   :  { %v89_v48 = vmul.f32 %v85_v41, %v51_v28  ;;  %v90_v50 = vmul.f32 %v86_v42, %v55_v29 }
   0xe   :  { %v65_v49 = vadd.f32 %v64_v46, %v62_v39  ;;  %v91_v51 = vadd.f32 %v88_v47, %v87_v43 }
  0x10   :  { %v66_v52 = vadd.f32 %v65_v49, %v63_v45  ;;  %v92_v53 = vadd.f32 %v91_v51, %v89_v48 }
  0x12   :  { %67 = vadd.xlane.f32.xlu0 %v66_v52  ;;  %v93_v54 = vadd.f32 %v92_v53, %v90_v50 }
  0x16   :  { %94 = vadd.xlane.f32.xlu0 %v93_v54 }
  0x9b   :  { %v68_v55 = vpop.xlane.xlu0 %67 }
  0x9c   :  { %v75_v56 = vrot.slane %v68_v55, %v74_v44 }
  0x9e   :  { %78 = vst.msk [vmem:[%s172_s3] sm:$0x1] %vm77_vm0, %v75_v56 }
  0x9f   :  { %v95_v57 = vpop.xlane.xlu0 %94 }
  0xa0   :  { %v100_v58 = vrot.slane %v95_v57, %v74_v44 }
  0xa2   :  { %102 = vst.msk [vmem:[%s173_s4] sm:$0x1] %vm77_vm0, %v100_v58 }

</bundles_post_ra>
